<compile_context>
chip_gen: v6e
topology: v6e:2x2x1
jax: 0.10.0
libtpu: 0.0.40
codegen_flags: <defaults>
</compile_context>

<pallas_src>
import numpy as np
import jax
import jax.numpy as jnp
from jax.experimental import pallas as pl
from jax.experimental.pallas import tpu as pltpu


LANE_ALIGN = 256      # MXU / lane-dense alignment (v6e/v7x; 128 suffices on v5e)
SUBLANE_BF16 = 16     # bf16 sublane packing
MAX_TILE = 512        # per review: 512-wide tiles ~85% of HBM roofline


def _round_up(x, m):
    return ((x + m - 1) // m) * m


def _largest_aligned_divisor(npad, cap):
    """Largest multiple of LANE_ALIGN that divides npad and is <= cap."""
    best = LANE_ALIGN
    t = LANE_ALIGN
    while t <= min(cap, npad):
        if npad % t == 0:
            best = t
        t += LANE_ALIGN
    return best


# ----------------------------- propagator (host glue, plain numpy) -----------
def propagator(prop, lam, total_size, dx):
    """prop distance in free space (same math as the PyTorch reference)."""
    def W(x, y, z, wavelength):
        r = np.sqrt(x * x + y * y + z * z)
        w = z / r ** 2 * (1 / (wavelength * 1j)) * np.exp(1j * 2 * np.pi * r / wavelength)
        return w
    x = np.arange(-(total_size - 1), total_size, 1) * dx
    G = W(x, 0, prop, lam)
    return G.astype(np.complex64)


# ----------------------------- Pallas kernel ---------------------------------
def _freespace_kernel(e2_ref, mr_ref, mi_ref, out_ref):
    """One (tb, tn) complex output tile, accumulated over the K grid axis.

    e2_ref : (2*tb, tk) bf16  -- rows [0:tb] = Er, rows [tb:2*tb] = Ei
    mr/mi  : (tk, tn)  bf16   -- real / imag Toeplitz tile
    out_ref: (2, tb, tn) f32  -- [0]=real plane, [1]=imag plane (resident over K)
    """
    @pl.when(pl.program_id(2) == 0)
    def _init():
        out_ref[...] = jnp.zeros(out_ref.shape, out_ref.dtype)

    e2 = e2_ref[...]
    # Two MXU dots instead of four: project the stacked [Er; Ei] rows.
    pr = jnp.dot(e2, mr_ref[...], preferred_element_type=jnp.float32)
    pi = jnp.dot(e2, mi_ref[...], preferred_element_type=jnp.float32)
    tb = out_ref.shape[1]
    # (Er + i*Ei) @ (Mr + i*Mi): real = Er@Mr - Ei@Mi, imag = Er@Mi + Ei@Mr.
    out_ref[0, :, :] += pr[:tb, :] - pi[tb:, :]
    out_ref[1, :, :] += pi[:tb, :] + pr[tb:, :]


def _freespace_matmul(e2, mr, mi, tb, tn, tk):
    rows, Kp = e2.shape
    _, Np = mr.shape
    nb = rows // (2 * tb)
    grid = (nb, Np // tn, Kp // tk)
    return pl.pallas_call(
        _freespace_kernel,
        out_shape=jax.ShapeDtypeStruct((2, nb * tb, Np), jnp.float32),
        grid_spec=pltpu.PrefetchScalarGridSpec(
            num_scalar_prefetch=0,
            grid=grid,
            in_specs=[
                pl.BlockSpec((2 * tb, tk), lambda i, j, k: (i, k)),   # stacked E
                pl.BlockSpec((tk, tn), lambda i, j, k: (k, j)),       # Mr
                pl.BlockSpec((tk, tn), lambda i, j, k: (k, j)),       # Mi
            ],
            out_specs=pl.BlockSpec((2, tb, tn), lambda i, j, k: (0, i, j)),
        ),
        compiler_params=pltpu.CompilerParams(
            dimension_semantics=("parallel", "parallel", "arbitrary"),
            vmem_limit_bytes=32 * 1024 * 1024,
        ),
    )(e2, mr, mi)


# ----------------------------- module-equivalent wrapper ---------------------
class FreespaceLayer:
    """Pallas/TPU equivalent of PyTorch freespace_layer (forward pass only)."""

    def __init__(self, prop, lam, total_size, dx):
        N = int(total_size)
        self.N = N
        # Pad only to 256 alignment (not the tile size) to avoid the quadratic
        # HBM-traffic tax of over-padding the Toeplitz planes.
        self.Npad = _round_up(N, LANE_ALIGN)

        # Tile selection: largest 256-aligned divisors of Npad up to 512.
        # tn additionally capped so the "parallel" j axis has >= 2 programs
        # when possible (keeps both v7x TensorCores busy for a single batch tile).
        self.tk = _largest_aligned_divisor(self.Npad, MAX_TILE)
        if self.Npad >= 2 * LANE_ALIGN:
            self.tn = _largest_aligned_divisor(self.Npad, min(MAX_TILE, self.Npad // 2))
        else:
            self.tn = self.Npad

        G = propagator(prop, lam, total_size, dx)          # (2N-1,) complex64
        # Toeplitz matrix of the "same"-size linear convolution:
        #   Ef = En @ M with M[j, i] = G[i - j + N - 1].
        # Precomputed once (like the torch module's f_kernel buffer), zero-padded
        # to (Npad, Npad), stored as bf16 real/imag planes (halves HBM traffic).
        idx = np.arange(N)[None, :] - np.arange(N)[:, None] + (N - 1)
        M = G[idx]                                          # (N, N) complex64
        Mp = np.zeros((self.Npad, self.Npad), dtype=np.complex64)
        Mp[:N, :N] = M
        self.mr = jnp.asarray(Mp.real, dtype=jnp.bfloat16)
        self.mi = jnp.asarray(Mp.imag, dtype=jnp.bfloat16)

    def __call__(self, En):
        B, N = En.shape
        assert N == self.N
        Npad, tn, tk = self.Npad, self.tn, self.tk

        if B <= 128:
            tb = _round_up(B, SUBLANE_BF16)
        else:
            # Larger batch tile halves how often the Toeplitz planes are
            # re-streamed from HBM (their index_map ignores the batch axis).
            tb = 256
        Bpad = _round_up(B, tb)
        nb = Bpad // tb

        er = jnp.pad(jnp.real(En).astype(jnp.float32),
                     ((0, Bpad - B), (0, Npad - N)))
        ei = jnp.pad(jnp.imag(En).astype(jnp.float32),
                     ((0, Bpad - B), (0, Npad - N)))
        # Stack real/imag rows per batch tile -> one LHS per tile, so the kernel
        # needs only 2 MXU dots (M traffic, the dominant cost, is unchanged).
        e2 = jnp.concatenate(
            [er.reshape(nb, tb, Npad), ei.reshape(nb, tb, Npad)], axis=1
        ).reshape(nb * 2 * tb, Npad).astype(jnp.bfloat16)

        out = _freespace_matmul(e2, self.mr, self.mi, tb, tn, tk)
        Ef = (out[0, :B, :N] + 1j * out[1, :B, :N]).astype(jnp.complex64)
        return Ef


# ----------------------------- reference (FFT path, like PyTorch) ------------
def _reference_fft(En, G):
    N = En.shape[-1]
    f_kernel = jnp.fft.fft(jnp.fft.ifftshift(jnp.asarray(G)))
    En_pad = jnp.pad(En, ((0, 0), (0, N - 1)))
    Ef = jnp.fft.ifft(jnp.fft.fft(En_pad, axis=-1) * f_kernel[None, :], axis=-1)
    return Ef[..., :N]


# ----------------------------- demo -------------------------------------------
if __name__ == "__main__":
    # freespace_layer(prop, lam, total_size, dx) — small deterministic setup.
    prop, lam, total_size, dx = 5.0, 0.6328, 16, 0.1
    B, N = 2, total_size

    layer = FreespaceLayer(prop, lam, total_size, dx)

    key = jax.random.PRNGKey(0)
    kr, ki = jax.random.split(key)
    En = (jax.random.normal(kr, (B, N), dtype=jnp.float32)
          + 1j * jax.random.normal(ki, (B, N), dtype=jnp.float32)).astype(jnp.complex64)

    Ef = layer(En)
    Ef = jax.block_until_ready(Ef)

    G = propagator(prop, lam, total_size, dx)
    Ef_ref = np.asarray(_reference_fft(En, G))

    assert Ef.shape == (B, N) and Ef.dtype == jnp.complex64
    err = float(np.max(np.abs(np.asarray(Ef) - Ef_ref)))
    scale = float(max(np.max(np.abs(Ef_ref)), 1.0))
    # bf16 operands + f32 accumulation -> keep a bf16-appropriate tolerance.
    assert err <= 5e-2 * scale, (err, scale)

    print("KERNEL_OK")
</pallas_src>

<mosaic_0001>
module attributes {stable_mosaic.version = 11 : i64} {
  func.func @_freespace_kernel(%arg0: i32, %arg1: i32, %arg2: i32, %arg3: memref<32x256xbf16, #tpu.memory_space<vmem>>, %arg4: memref<256x256xbf16, #tpu.memory_space<vmem>>, %arg5: memref<256x256xbf16, #tpu.memory_space<vmem>>, %arg6: memref<2x16x256xf32, #tpu.memory_space<vmem>>) attributes {dimension_semantics = [#tpu.dimension_semantics<parallel>, #tpu.dimension_semantics<parallel>, #tpu.dimension_semantics<arbitrary>], iteration_bounds = array<i64: 1, 1, 1>, scalar_prefetch = 0 : i64, scratch_operands = 0 : i64, tpu.core_type = #tpu.core_type<tc>, window_params = [{transform_indices = @transform_0, window_bounds = array<i64: 32, 256>}, {transform_indices = @transform_1, window_bounds = array<i64: 256, 256>}, {transform_indices = @transform_2, window_bounds = array<i64: 256, 256>}, {transform_indices = @transform_3, window_bounds = array<i64: 2, 16, 256>}]} {
    %c0_i32 = arith.constant 0 : i32
    %0 = arith.cmpi eq, %arg2, %c0_i32 : i32
    %1 = arith.extui %0 : i1 to i32
    %c0_i32_0 = arith.constant 0 : i32
    %2 = arith.cmpi ne, %1, %c0_i32_0 : i32
    scf.if %2 {
      %cst_18 = arith.constant 0.000000e+00 : f32
      %26 = vector.broadcast %cst_18 : f32 to vector<2x16x256xf32>
      %c0_19 = arith.constant 0 : index
      %c0_20 = arith.constant 0 : index
      %c0_21 = arith.constant 0 : index
      %27 = vector.load %arg6[%c0_19, %c0_20, %c0_21] : memref<2x16x256xf32, #tpu.memory_space<vmem>>, vector<2x16x256xf32>
      tpu.vector_store %arg6[%c0_19, %c0_20, %c0_21], %26 {strides = array<i32>} : memref<2x16x256xf32, #tpu.memory_space<vmem>>, vector<2x16x256xf32>,
    } else {
    }
    %c0 = arith.constant 0 : index
    %c0_1 = arith.constant 0 : index
    %3 = vector.load %arg3[%c0, %c0_1] : memref<32x256xbf16, #tpu.memory_space<vmem>>, vector<32x256xbf16>
    %c0_2 = arith.constant 0 : index
    %c0_3 = arith.constant 0 : index
    %4 = vector.load %arg4[%c0_2, %c0_3] : memref<256x256xbf16, #tpu.memory_space<vmem>>, vector<256x256xbf16>
    %cst = arith.constant dense<0.000000e+00> : vector<32x256xf32>
    %5 = tpu.matmul %3, %4, %cst {dimension_numbers = #tpu.dot_dimension_numbers<[1], [0], [0], [1], [0, 0, 1, 1], [], []>} : vector<32x256xbf16>, vector<256x256xbf16>, vector<32x256xf32> -> vector<32x256xf32>
    %c0_4 = arith.constant 0 : index
    %c0_5 = arith.constant 0 : index
    %6 = vector.load %arg5[%c0_4, %c0_5] : memref<256x256xbf16, #tpu.memory_space<vmem>>, vector<256x256xbf16>
    %cst_6 = arith.constant dense<0.000000e+00> : vector<32x256xf32>
    %7 = tpu.matmul %3, %6, %cst_6 {dimension_numbers = #tpu.dot_dimension_numbers<[1], [0], [0], [1], [0, 0, 1, 1], [], []>} : vector<32x256xbf16>, vector<256x256xbf16>, vector<32x256xf32> -> vector<32x256xf32>
    %c0_7 = arith.constant 0 : index
    %c0_8 = arith.constant 0 : index
    %c0_9 = arith.constant 0 : index
    %8 = vector.load %arg6[%c0_7, %c0_8, %c0_9] : memref<2x16x256xf32, #tpu.memory_space<vmem>>, vector<1x16x256xf32>
    %9 = vector.shape_cast %8 : vector<1x16x256xf32> to vector<16x256xf32>
    %10 = vector.extract_strided_slice %5 {offsets = [0, 0], sizes = [16, 256], strides = [1, 1]} : vector<32x256xf32> to vector<16x256xf32>
    %11 = vector.extract_strided_slice %7 {offsets = [16, 0], sizes = [16, 256], strides = [1, 1]} : vector<32x256xf32> to vector<16x256xf32>
    %12 = arith.subf %10, %11 : vector<16x256xf32>
    %13 = arith.addf %9, %12 : vector<16x256xf32>
    %c0_10 = arith.constant 0 : index
    %c0_11 = arith.constant 0 : index
    %c0_12 = arith.constant 0 : index
    %14 = vector.load %arg6[%c0_10, %c0_11, %c0_12] : memref<2x16x256xf32, #tpu.memory_space<vmem>>, vector<1x16x256xf32>
    %15 = vector.shape_cast %14 : vector<1x16x256xf32> to vector<16x256xf32>
    %16 = vector.shape_cast %13 : vector<16x256xf32> to vector<1x16x256xf32>
    tpu.vector_store %arg6[%c0_10, %c0_11, %c0_12], %16 {strides = array<i32>} : memref<2x16x256xf32, #tpu.memory_space<vmem>>, vector<1x16x256xf32>,
    %c1 = arith.constant 1 : index
    %c0_13 = arith.constant 0 : index
    %c0_14 = arith.constant 0 : index
    %17 = vector.load %arg6[%c1, %c0_13, %c0_14] : memref<2x16x256xf32, #tpu.memory_space<vmem>>, vector<1x16x256xf32>
    %18 = vector.shape_cast %17 : vector<1x16x256xf32> to vector<16x256xf32>
    %19 = vector.extract_strided_slice %7 {offsets = [0, 0], sizes = [16, 256], strides = [1, 1]} : vector<32x256xf32> to vector<16x256xf32>
    %20 = vector.extract_strided_slice %5 {offsets = [16, 0], sizes = [16, 256], strides = [1, 1]} : vector<32x256xf32> to vector<16x256xf32>
    %21 = arith.addf %19, %20 : vector<16x256xf32>
    %22 = arith.addf %18, %21 : vector<16x256xf32>
    %c1_15 = arith.constant 1 : index
    %c0_16 = arith.constant 0 : index
    %c0_17 = arith.constant 0 : index
    %23 = vector.load %arg6[%c1_15, %c0_16, %c0_17] : memref<2x16x256xf32, #tpu.memory_space<vmem>>, vector<1x16x256xf32>
    %24 = vector.shape_cast %23 : vector<1x16x256xf32> to vector<16x256xf32>
    %25 = vector.shape_cast %22 : vector<16x256xf32> to vector<1x16x256xf32>
    tpu.vector_store %arg6[%c1_15, %c0_16, %c0_17], %25 {strides = array<i32>} : memref<2x16x256xf32, #tpu.memory_space<vmem>>, vector<1x16x256xf32>,
    return
  }
  func.func @transform_0(%arg0: i32, %arg1: i32, %arg2: i32) -> (i32, i32) {
    %c0_i32 = arith.constant 0 : i32
    return %arg0, %arg2 : i32, i32
  }
  func.func @transform_1(%arg0: i32, %arg1: i32, %arg2: i32) -> (i32, i32) {
    %c0_i32 = arith.constant 0 : i32
    return %arg2, %arg1 : i32, i32
  }
  func.func @transform_2(%arg0: i32, %arg1: i32, %arg2: i32) -> (i32, i32) {
    %c0_i32 = arith.constant 0 : i32
    return %arg2, %arg1 : i32, i32
  }
  func.func @transform_3(%arg0: i32, %arg1: i32, %arg2: i32) -> (i32, i32, i32) {
    %c0_i32 = arith.constant 0 : i32
    %c0_i32_0 = arith.constant 0 : i32
    return %c0_i32, %arg0, %arg1 : i32, i32, i32
  }
}

</mosaic_0001>

<bundles_post_ra>
// kernel: tpu_custom_call.1
= control target key start
LH: loop header
LB: loop body
LE: loop exit
PB: predicated region body
PF: predicated region fallthrough
CT: control target
= control target key end

     0   :  { %8 = vsyncpa [#allocation3], 0  ;;  %s938_s0 = inlined_call_operand.hbm [shape: bf16[32,256], index: 0, kind: input, shape index: {}]   ;;  %s939_s1 = inlined_call_operand.hbm [shape: bf16[256,256], index: 1, kind: input, shape index: {}]   ;;  %s940_s2 = inlined_call_operand.hbm [shape: bf16[256,256], index: 2, kind: input, shape index: {}]   ;;  %s941_s3 = inlined_call_operand.hbm [shape: f32[2,16,256], index: 3, kind: output, shape index: {}]  }
   0x1   :  { %9 = vsyncpa [#allocation6], 0 }
   0x2   :  { %10 = vsyncpa [#allocation4], 0  ;;  %s898_s12 = smov [#allocation5]   ;;  %s899_s14 = smov [#allocation2]  }
   0x3   :  { %s28_s13 = sshll.u32 %s898_s12, 4  ;;  %s16_s15 = sshll.u32 %s899_s14, 4  ;;  %s29_s13 = int_to_ptr.vmem [resolvable:$true] %s28_s13  ;;  %s17_s15 = int_to_ptr.vmem [resolvable:$true] %s16_s15 }
   0x4   :  { %s820_s16 = scalar_lea.vmem %s29_s13, 4096  ;;  %p825_p1 = scmp.lt.s32.totalorder %s29_s13, %s29_s13 }
   0x5   :  { %p821_p0 = scmp.ne.s32.totalorder %s29_s13, %s820_s16  ;;  %p826_p2 = scmp.lt.s32.totalorder %s820_s16, %s820_s16 }
   0x7   :  { %p827_p3 = por %p826_p2, %p825_p1 }
   0x9   :  { %p828_p4 = pnand %p827_p3, %p821_p0 }
   0xb   :  { %831 = shalt.err (!%p828_p4)
}
   0xc   :  { %s900_s17 = smov 128   ;;  %s901_s18 = smov 8  }
   0xd   :  { %34 = dma.hbm_to_vmem [thread:$0]  %s939_s1, 4096, %s29_s13, [#allocation6], %s900_s17, %s900_s17, %s901_s18  }
   0xe   :  { %s840_s21 = scalar_lea.vmem %s17_s15, 512  ;;  %p845_p6 = scmp.lt.s32.totalorder %s17_s15, %s17_s15 }
   0xf   :  { %p841_p5 = scmp.ne.s32.totalorder %s17_s15, %s840_s21  ;;  %p846_p7 = scmp.lt.s32.totalorder %s840_s21, %s840_s21 }
  0x11   :  { %p847_p8 = por %p846_p7, %p845_p6 }
  0x13   :  { %p848_p9 = pnand %p847_p8, %p841_p5 }
  0x15   :  { %851 = shalt.err (!%p848_p9)
}
  0x16   :  { %22 = dma.hbm_to_vmem [thread:$0]  %s938_s0, 512, %s17_s15, [#allocation3], %s900_s17, %s900_s17, %s901_s18  }
  0x17   :  { %s902_s24 = smov [#allocation7]  }
  0x18   :  { %s40_s25 = sshll.u32 %s902_s24, 4  ;;  %s41_s25 = int_to_ptr.vmem [resolvable:$true] %s40_s25 }
  0x19   :  { %s860_s26 = scalar_lea.vmem %s41_s25, 4096  ;;  %p865_p11 = scmp.lt.s32.totalorder %s41_s25, %s41_s25 }
  0x1a   :  { %p861_p10 = scmp.ne.s32.totalorder %s41_s25, %s860_s26  ;;  %p866_p12 = scmp.lt.s32.totalorder %s860_s26, %s860_s26 }
  0x1c   :  { %p867_p13 = por %p866_p12, %p865_p11 }
  0x1e   :  { %p868_p0 = pnand %p867_p13, %p861_p10 }
  0x20   :  { %871 = shalt.err (!%p868_p0)
}
  0x21   :  { %46 = dma.hbm_to_vmem [thread:$0]  %s940_s2, 4096, %s41_s25, [#allocation6], %s900_s17, %s900_s17, %s901_s18  }
  0x22   :  { %892 = dma.done.wait [#allocation3], 512  }
  0x23   :  { %893 = vsyncadd [#allocation3], 4294966784 }
  0x24   :  { %894 = dma.done.wait [#allocation6], 8192  }
  0x25   :  { %895 = vsyncadd [#allocation6], 4294959104  ;;  %v710_v0 = vld [vmem:[#allocation5 + $0x74] ss:$8 sps:$4 sm:$0xff]   ;;  %v714_v2 = vld [vmem:[#allocation5 + $0x70] ss:$8 sps:$4 sm:$0xff]  }
  0x26   :  { %v712_v1 = vld [vmem:[#allocation7 + $0x74] ss:$8 sps:$4 sm:$0xff]   ;;  %284 = vmatprep.subr.bf16.mxu0 %v710_v0  ;;  %v715_v3 = vld [vmem:[#allocation7 + $0x70] ss:$8 sps:$4 sm:$0xff]   ;;  %v716_v4 = vld [vmem:[#allocation5 + $0x64] ss:$8 sps:$4 sm:$0xff]  }
  0x27   :  { %529 = vmatprep.subr.bf16.mxu1 %v712_v1  ;;  %285 = vmatpush1.bf16.msra.mxu0 %v714_v2  ;;  %v718_v5 = vld [vmem:[#allocation7 + $0x64] ss:$8 sps:$4 sm:$0xff]   ;;  %v720_v6 = vld [vmem:[#allocation5 + $0x60] ss:$8 sps:$4 sm:$0xff]   ;;  %v722_v8 = vld [vmem:[#allocation5 + $0x54] ss:$8 sps:$4 sm:$0xff]  }
  0x28   :  { %530 = vmatpush1.bf16.msra.mxu1 %v715_v3  ;;  %286 = vmatprep.subr.bf16.mxu0 %v716_v4  ;;  %v721_v7 = vld [vmem:[#allocation7 + $0x60] ss:$8 sps:$4 sm:$0xff]   ;;  %v724_v9 = vld [vmem:[#allocation7 + $0x54] ss:$8 sps:$4 sm:$0xff]   ;;  %v726_v10 = vld [vmem:[#allocation5 + $0x50] ss:$8 sps:$4 sm:$0xff]  }
  0x29   :  { %531 = vmatprep.subr.bf16.mxu1 %v718_v5  ;;  %v727_v11 = vld [vmem:[#allocation7 + $0x50] ss:$8 sps:$4 sm:$0xff]   ;;  %v728_v12 = vld [vmem:[#allocation5 + $0x44] ss:$8 sps:$4 sm:$0xff]   ;;  %v732_v14 = vld [vmem:[#allocation5 + $0x40] ss:$8 sps:$4 sm:$0xff]  }
  0x2a   :  { %v730_v13 = vld [vmem:[#allocation7 + $0x44] ss:$8 sps:$4 sm:$0xff]   ;;  %v733_v15 = vld [vmem:[#allocation7 + $0x40] ss:$8 sps:$4 sm:$0xff]   ;;  %v734_v16 = vld [vmem:[#allocation5 + $0x34] ss:$8 sps:$4 sm:$0xff]  }
  0x2b   :  { %287 = vmatpush1.bf16.msra.mxu0 %v720_v6  ;;  %v736_v17 = vld [vmem:[#allocation7 + $0x34] ss:$8 sps:$4 sm:$0xff]   ;;  %v738_v18 = vld [vmem:[#allocation5 + $0x30] ss:$8 sps:$4 sm:$0xff]   ;;  %v740_v20 = vld [vmem:[#allocation5 + $0x24] ss:$8 sps:$4 sm:$0xff]  }
  0x2c   :  { %532 = vmatpush1.bf16.msra.mxu1 %v721_v7  ;;  %288 = vmatprep.subr.bf16.mxu0 %v722_v8  ;;  %v739_v19 = vld [vmem:[#allocation7 + $0x30] ss:$8 sps:$4 sm:$0xff]   ;;  %v742_v21 = vld [vmem:[#allocation7 + $0x24] ss:$8 sps:$4 sm:$0xff]   ;;  %v744_v22 = vld [vmem:[#allocation5 + $0x20] ss:$8 sps:$4 sm:$0xff]  }
  0x2d   :  { %533 = vmatprep.subr.bf16.mxu1 %v724_v9  ;;  %v745_v23 = vld [vmem:[#allocation7 + $0x20] ss:$8 sps:$4 sm:$0xff]   ;;  %v746_v24 = vld [vmem:[#allocation5 + $0x14] ss:$8 sps:$4 sm:$0xff]   ;;  %v750_v26 = vld [vmem:[#allocation5 + $0x10] ss:$8 sps:$4 sm:$0xff]  }
  0x2e   :  { %v748_v25 = vld [vmem:[#allocation7 + $0x14] ss:$8 sps:$4 sm:$0xff]   ;;  %v751_v27 = vld [vmem:[#allocation7 + $0x10] ss:$8 sps:$4 sm:$0xff]   ;;  %v752_v28 = vld [vmem:[#allocation5 + $0x4] ss:$8 sps:$4 sm:$0xff]  }
  0x2f   :  { %289 = vmatpush1.bf16.msra.mxu0 %v726_v10  ;;  %v754_v29 = vld [vmem:[#allocation7 + $0x4] ss:$8 sps:$4 sm:$0xff]   ;;  %v756_v30 = vld [vmem:[#allocation5] ss:$8 sps:$4 sm:$0xff]   ;;  %v758_v32 = vld [vmem:[#allocation5 + $0xf4] ss:$8 sps:$4 sm:$0xff]  }
  0x30   :  { %534 = vmatpush1.bf16.msra.mxu1 %v727_v11  ;;  %290 = vmatprep.subr.bf16.mxu0 %v728_v12  ;;  %v757_v31 = vld [vmem:[#allocation7] ss:$8 sps:$4 sm:$0xff]   ;;  %v760_v33 = vld [vmem:[#allocation7 + $0xf4] ss:$8 sps:$4 sm:$0xff]   ;;  %v762_v34 = vld [vmem:[#allocation5 + $0xf0] ss:$8 sps:$4 sm:$0xff]  }
  0x31   :  { %535 = vmatprep.subr.bf16.mxu1 %v730_v13  ;;  %v763_v35 = vld [vmem:[#allocation7 + $0xf0] ss:$8 sps:$4 sm:$0xff]   ;;  %v764_v36 = vld [vmem:[#allocation5 + $0xe4] ss:$8 sps:$4 sm:$0xff]   ;;  %v768_v38 = vld [vmem:[#allocation5 + $0xe0] ss:$8 sps:$4 sm:$0xff]  }
  0x32   :  { %v766_v37 = vld [vmem:[#allocation7 + $0xe4] ss:$8 sps:$4 sm:$0xff]   ;;  %v769_v39 = vld [vmem:[#allocation7 + $0xe0] ss:$8 sps:$4 sm:$0xff]   ;;  %v770_v40 = vld [vmem:[#allocation5 + $0xd4] ss:$8 sps:$4 sm:$0xff]  }
  0x33   :  { %291 = vmatpush1.bf16.msra.mxu0 %v732_v14  ;;  %v772_v41 = vld [vmem:[#allocation7 + $0xd4] ss:$8 sps:$4 sm:$0xff]   ;;  %v774_v42 = vld [vmem:[#allocation5 + $0xd0] ss:$8 sps:$4 sm:$0xff]   ;;  %v776_v44 = vld [vmem:[#allocation5 + $0xc4] ss:$8 sps:$4 sm:$0xff]  }
  0x34   :  { %536 = vmatpush1.bf16.msra.mxu1 %v733_v15  ;;  %292 = vmatprep.subr.bf16.mxu0 %v734_v16  ;;  %v775_v43 = vld [vmem:[#allocation7 + $0xd0] ss:$8 sps:$4 sm:$0xff]   ;;  %v778_v45 = vld [vmem:[#allocation7 + $0xc4] ss:$8 sps:$4 sm:$0xff]   ;;  %v780_v46 = vld [vmem:[#allocation5 + $0xc0] ss:$8 sps:$4 sm:$0xff]  }
  0x35   :  { %537 = vmatprep.subr.bf16.mxu1 %v736_v17  ;;  %v808_v47 = vld [vmem:[#allocation2 + $0x4] ss:$8 sps:$4 sm:$0xff]   ;;  %v781_v48 = vld [vmem:[#allocation7 + $0xc0] ss:$8 sps:$4 sm:$0xff]   ;;  %v782_v49 = vld [vmem:[#allocation5 + $0xb4] ss:$8 sps:$4 sm:$0xff]  }
  0x36   :  { %v784_v50 = vld [vmem:[#allocation7 + $0xb4] ss:$8 sps:$4 sm:$0xff]   ;;  %316 = vmatprep.mubr.bf16.mxu0 %v808_v47  ;;  %561 = vmatprep.mubr.bf16.mxu1 %v808_v47  ;;  %v786_v51 = vld [vmem:[#allocation5 + $0xb0] ss:$8 sps:$4 sm:$0xff]   ;;  %v788_v53 = vld [vmem:[#allocation5 + $0xa4] ss:$8 sps:$4 sm:$0xff]  }
  0x37   :  { %293 = vmatpush1.bf16.msra.mxu0 %v738_v18  ;;  %v787_v52 = vld [vmem:[#allocation7 + $0xb0] ss:$8 sps:$4 sm:$0xff]   ;;  %v790_v54 = vld [vmem:[#allocation7 + $0xa4] ss:$8 sps:$4 sm:$0xff]   ;;  %v792_v55 = vld [vmem:[#allocation5 + $0xa0] ss:$8 sps:$4 sm:$0xff]  }
  0x38   :  { %538 = vmatpush1.bf16.msra.mxu1 %v739_v19  ;;  %294 = vmatprep.subr.bf16.mxu0 %v740_v20  ;;  %v793_v56 = vld [vmem:[#allocation7 + $0xa0] ss:$8 sps:$4 sm:$0xff]   ;;  %v794_v57 = vld [vmem:[#allocation5 + $0x94] ss:$8 sps:$4 sm:$0xff]   ;;  %v798_v59 = vld [vmem:[#allocation5 + $0x90] ss:$8 sps:$4 sm:$0xff]  }
  0x39   :  { %539 = vmatprep.subr.bf16.mxu1 %v742_v21  ;;  %v796_v58 = vld [vmem:[#allocation7 + $0x94] ss:$8 sps:$4 sm:$0xff]   ;;  %v799_v60 = vld [vmem:[#allocation7 + $0x90] ss:$8 sps:$4 sm:$0xff]   ;;  %v800_v61 = vld [vmem:[#allocation5 + $0x84] ss:$8 sps:$4 sm:$0xff]  }
  0x3a   :  { %v802_v62 = vld [vmem:[#allocation7 + $0x84] ss:$8 sps:$4 sm:$0xff]   ;;  %v804_v63 = vld [vmem:[#allocation5 + $0x80] ss:$8 sps:$4 sm:$0xff]   ;;  %v809_v2 = vld [vmem:[#allocation2 + $0x14] ss:$8 sps:$4 sm:$0xff]  }
  0x3b   :  { %295 = vmatpush1.bf16.msra.mxu0 %v744_v22  ;;  %v805_v0 = vld [vmem:[#allocation7 + $0x80] ss:$8 sps:$4 sm:$0xff]   ;;  %v811_v3 = vld [vmem:[#allocation2 + $0x10] ss:$8 sps:$4 sm:$0xff]   ;;  %s903_s0 = smov [#allocation8]  }
  0x3c   :  { %540 = vmatpush1.bf16.msra.mxu1 %v745_v23  ;;  %296 = vmatprep.subr.bf16.mxu0 %v746_v24  ;;  %v806_v1 = vld [vmem:[#allocation2] ss:$8 sps:$4 sm:$0xff]   ;;  %s620_s2 = sshll.u32 %s903_s0, 4  ;;  %s621_s2 = int_to_ptr.vmem [resolvable:$true] %s620_s2 }
  0x3d   :  { %541 = vmatprep.subr.bf16.mxu1 %v748_v25  ;;  %s872_s28 = scalar_lea.vmem %s621_s2, 1024  ;;  %p877_p2 = scmp.lt.s32.totalorder %s621_s2, %s621_s2 }
  0x3e   :  { %p873_p1 = scmp.ne.s32.totalorder %s621_s2, %s872_s28  ;;  %p878_p3 = scmp.lt.s32.totalorder %s872_s28, %s872_s28 }
  0x3f   :  { %297 = vmatpush1.bf16.msra.mxu0 %v750_v26 }
  0x40   :  { %542 = vmatpush1.bf16.msra.mxu1 %v751_v27  ;;  %298 = vmatprep.subr.bf16.mxu0 %v752_v28  ;;  %p879_p4 = por %p878_p3, %p877_p2 }
  0x41   :  { %543 = vmatprep.subr.bf16.mxu1 %v754_v29 }
  0x42   :  { %p880_p5 = pnand %p879_p4, %p873_p1 }
  0x43   :  { %299 = vmatpush1.bf16.msra.mxu0 %v756_v30 }
  0x44   :  { %544 = vmatpush1.bf16.msra.mxu1 %v757_v31  ;;  %300 = vmatprep.subr.bf16.mxu0 %v758_v32 }
  0x45   :  { %545 = vmatprep.subr.bf16.mxu1 %v760_v33 }
  0x47   :  { %301 = vmatpush2.bf16.msra.mxu0 %v762_v34 }
  0x48   :  { %546 = vmatpush2.bf16.msra.mxu1 %v763_v35  ;;  %302 = vmatprep.subr.bf16.mxu0 %v764_v36 }
  0x49   :  { %547 = vmatprep.subr.bf16.mxu1 %v766_v37 }
  0x4b   :  { %303 = vmatpush2.bf16.msra.mxu0 %v768_v38 }
  0x4c   :  { %548 = vmatpush2.bf16.msra.mxu1 %v769_v39  ;;  %304 = vmatprep.subr.bf16.mxu0 %v770_v40 }
  0x4d   :  { %549 = vmatprep.subr.bf16.mxu1 %v772_v41 }
  0x4f   :  { %305 = vmatpush2.bf16.msra.mxu0 %v774_v42 }
  0x50   :  { %550 = vmatpush2.bf16.msra.mxu1 %v775_v43  ;;  %306 = vmatprep.subr.bf16.mxu0 %v776_v44 }
  0x51   :  { %551 = vmatprep.subr.bf16.mxu1 %v778_v45 }
  0x53   :  { %307 = vmatpush2.bf16.msra.mxu0 %v780_v46 }
  0x54   :  { %552 = vmatpush2.bf16.msra.mxu1 %v781_v48  ;;  %308 = vmatprep.subr.bf16.mxu0 %v782_v49 }
  0x55   :  { %553 = vmatprep.subr.bf16.mxu1 %v784_v50 }
  0x57   :  { %309 = vmatpush2.bf16.msra.mxu0 %v786_v51 }
  0x58   :  { %554 = vmatpush2.bf16.msra.mxu1 %v787_v52  ;;  %310 = vmatprep.subr.bf16.mxu0 %v788_v53 }
  0x59   :  { %555 = vmatprep.subr.bf16.mxu1 %v790_v54 }
  0x5b   :  { %311 = vmatpush2.bf16.msra.mxu0 %v792_v55 }
  0x5c   :  { %556 = vmatpush2.bf16.msra.mxu1 %v793_v56  ;;  %312 = vmatprep.subr.bf16.mxu0 %v794_v57 }
  0x5d   :  { %557 = vmatprep.subr.bf16.mxu1 %v796_v58 }
  0x5f   :  { %313 = vmatpush2.bf16.msra.mxu0 %v798_v59 }
  0x60   :  { %558 = vmatpush2.bf16.msra.mxu1 %v799_v60  ;;  %314 = vmatprep.subr.bf16.mxu0 %v800_v61 }
  0x61   :  { %559 = vmatprep.subr.bf16.mxu1 %v802_v62 }
  0x63   :  { %315 = vmatpush2.bf16.msra.mxu0 %v804_v63 }
  0x64   :  { %560 = vmatpush2.bf16.msra.mxu1 %v805_v0 }
  0x66   :  { %317 = vmatmul.mubr.bf16.vlgmr.msra.gmra.mxu0 %v806_v1 }
  0x67   :  { %562 = vmatmul.mubr.bf16.vlgmr.msra.gmra.mxu1 %v806_v1  ;;  %326 = vmatprep.mubr.bf16.mxu0 %v809_v2 }
  0x68   :  { %571 = vmatprep.mubr.bf16.mxu1 %v809_v2 }
  0x6e   :  { %327 = vmatmul.mubr.bf16.gmra.mxu0 %v811_v3 }
  0x6f   :  { %572 = vmatmul.mubr.bf16.gmra.mxu1 %v811_v3 }
 0x126   :  { %v318_v4 = vpop.f32.mrf.mxu0 }
 0x127   :  { %v563_v5 = vpop.f32.mrf.mxu1 }
 0x128   :  { %v320_v6 = vpop.f32.mrf.mxu0 }
 0x129   :  { %v565_v7 = vpop.f32.mrf.mxu1 }
 0x12a   :  { %v322_v8 = vpop.f32.mrf.mxu0 }
 0x12b   :  { %v567_v9 = vpop.f32.mrf.mxu1 }
 0x12c   :  { %v324_v10 = vpop.f32.mrf.mxu0 }
 0x12d   :  { %v569_v11 = vpop.f32.mrf.mxu1 }
 0x12e   :  { %v328_v12 = vpop.f32.mrf.mxu0 }
 0x12f   :  { %v573_v13 = vpop.f32.mrf.mxu1  ;;  %v603_v14 = vadd.f32 %v563_v5, %v328_v12 }
 0x130   :  { %v586_v15 = vsub.f32 %v318_v4, %v573_v13  ;;  %v330_v16 = vpop.f32.mrf.mxu0 }
 0x131   :  { %v575_v17 = vpop.f32.mrf.mxu1  ;;  %v604_v18 = vadd.f32 %v565_v7, %v330_v16  ;;  %611 = vst [vmem:[#allocation8 + $0x20] sm:$0xff] %v603_v14 }
 0x132   :  { %v587_v19 = vsub.f32 %v320_v6, %v575_v17  ;;  %v332_v20 = vpop.f32.mrf.mxu0  ;;  %594 = vst [vmem:[#allocation8] sm:$0xff] %v586_v15 }
 0x133   :  { %v577_v21 = vpop.f32.mrf.mxu1  ;;  %v605_v22 = vadd.f32 %v567_v9, %v332_v20  ;;  %612 = vst [vmem:[#allocation8 + $0x28] sm:$0xff] %v604_v18 }
 0x134   :  { %v588_v23 = vsub.f32 %v322_v8, %v577_v21  ;;  %v334_v24 = vpop.f32.mrf.mxu0  ;;  %595 = vst [vmem:[#allocation8 + $0x8] sm:$0xff] %v587_v19 }
 0x135   :  { %v579_v25 = vpop.f32.mrf.mxu1  ;;  %v606_v26 = vadd.f32 %v569_v11, %v334_v24  ;;  %613 = vst [vmem:[#allocation8 + $0x30] sm:$0xff] %v605_v22 }
 0x136   :  { %v589_v27 = vsub.f32 %v324_v10, %v579_v25  ;;  %596 = vst [vmem:[#allocation8 + $0x10] sm:$0xff] %v588_v23 }
 0x137   :  { %614 = vst [vmem:[#allocation8 + $0x38] sm:$0xff] %v606_v26 }
 0x138   :  { %597 = vst [vmem:[#allocation8 + $0x18] sm:$0xff] %v589_v27 }
 0x139   :  { %883 = shalt.err (!%p880_p5)
}
 0x13a   :  { %s904_s29 = smov 256   ;;  %s905_s30 = smov 16  }
 0x13b   :  { %626 = dma.vmem_to_hbm [thread:$0]  %s621_s2, 1024, %s941_s3, [#allocation4], %s904_s29, %s904_s29, %s905_s30  }
 0x13c   :  { %896 = dma.done.wait [#allocation4], 1024  }
 0x13d   :  { %897 = vsyncadd [#allocation4], 4294966272 }
 0x13e   :  { %630 = vsyncpa [#allocation3], 1 }
 0x13f   :  { %631 = vsyncpa [#allocation6], 1 }
 0x140   :  { %632 = vsyncpa [#allocation4], 1 }

</bundles_post_ra>
